<compile_context>
chip_gen: v7x
topology: tpu7x:2x2x1
jax: 0.10.0
libtpu: 0.0.40
codegen_flags: <defaults>
</compile_context>

<pallas_src>
import numpy as np
import jax
import jax.numpy as jnp
from jax import lax
from jax.experimental import pallas as pl
from jax.experimental.pallas import tpu as pltpu


S_TILE_MAX = 1024                    # max contraction tile (support rows / step)
VMEM_BUDGET = 36 * 1024 * 1024       # conservative: fits v7x 64 MiB with headroom


def _round_up(x, m):
    return ((x + m - 1) // m) * m


def _cdiv(a, b):
    return -(-a // b)


def _vmem_use(B_pad, D_pad, s_tile, c_chunk):
    return (D_pad * c_chunk * 4            # f32 accumulator
            + 2 * s_tile * D_pad * 2       # supports double buffer (bf16)
            + 2 * s_tile * c_chunk * 2     # labels double buffer (bf16)
            + 2 * B_pad * D_pad * 4        # z (f32, resident)
            + 2 * B_pad * c_chunk * 4)     # out (f32)


def _choose_tiles(B_pad, D_pad, S, C_pad):
    """Pick (s_tile, c_chunk, n_c) under the VMEM budget."""
    # Contraction (S) tile: as large as sensible, sized to the actual S so the
    # tail tile does not drag in lots of zero padding.
    n_s0 = max(1, _cdiv(S, S_TILE_MAX))
    if n_s0 == 1:
        s_tile = max(16, _round_up(S, 16))
    else:
        s_tile = _round_up(_cdiv(S, n_s0), 256)
    while s_tile > 256 and _vmem_use(B_pad, D_pad, s_tile, 128) > VMEM_BUDGET:
        s_tile = _round_up(s_tile // 2, 256)

    # Widest C chunk (multiple of 128) that fits VMEM: fewer chunks == fewer
    # HBM passes over the [S, D] supports matrix (ideally exactly one).
    c_chunk = 128
    c = 256
    while c <= C_pad and _vmem_use(B_pad, D_pad, s_tile, c) <= VMEM_BUDGET:
        c_chunk = c
        c += 128
    c_chunk = min(c_chunk, C_pad)
    n_c = _cdiv(C_pad, c_chunk)
    c_chunk = _round_up(_cdiv(C_pad, n_c), 128)   # rebalance chunk widths
    return s_tile, c_chunk, n_c


# ----------------------------- Pallas kernel --------------------------------

def t3a_kernel(sup_ref, lab_ref, z_ref, out_ref, acc_ref):
    """Grid = (C chunks ['parallel'], S tiles ['arbitrary' reduction, last]).

    sup_ref: [s_tile, D_pad]   bf16  (natural [S, D] layout, no host transpose)
    lab_ref: [s_tile, C_chunk] bf16  (labels pre-scaled by 1/||support_row||)
    z_ref:   [B_pad, D_pad]    f32   (resident)
    out_ref: [B_pad, C_chunk]  f32
    acc_ref: [D_pad, C_chunk]  f32   VMEM accumulator
    """
    k = pl.program_id(1)

    @pl.when(k == 0)
    def _init():
        acc_ref[...] = jnp.zeros_like(acc_ref)

    # w[D, Cc] += supports[St, D].T @ labels_scaled[St, Cc]
    # Contract dim 0 of both operands (TN form): Mosaic handles the transposed
    # LHS on the XLU path, so we avoid a host-side [S, D] -> [D, S] transpose.
    acc_ref[...] += lax.dot_general(
        sup_ref[...], lab_ref[...],
        dimension_numbers=(((0,), (0,)), ((), ())),
        preferred_element_type=jnp.float32)

    @pl.when(k == pl.num_programs(1) - 1)
    def _finalize():
        w = acc_ref[...]                                    # [D, Cc] f32
        # Column normalization folded into the tiny [B, Cc] output scaling.
        col_ss = jnp.sum(w * w, axis=0, keepdims=True)      # [1, Cc]
        inv_col = lax.rsqrt(jnp.maximum(col_ss, 1e-24))     # 1/max(||w_col||,1e-12)
        # Keep w in f32 for the (tiny) second matmul: no extra bf16 rounding.
        prod = jnp.dot(z_ref[...], w, preferred_element_type=jnp.float32)
        out_ref[...] = (prod * inv_col).astype(out_ref.dtype)


@jax.jit
def t3a_adjust(z, supports, labels):
    """Fused T3A template adjustment on TPU.

    out = z @ normalize(normalize(supports, dim=1).T @ labels, dim=0)
    """
    z = jnp.asarray(z, jnp.float32)
    supports = jnp.asarray(supports)
    labels = jnp.asarray(labels)
    B, D = z.shape
    S, C = labels.shape
    assert supports.shape == (S, D)

    # --- fold the per-support row normalization into the [S, C] labels (f32) --
    sup32 = supports.astype(jnp.float32)
    row_ss = jnp.sum(sup32 * sup32, axis=1, keepdims=True)            # [S, 1]
    inv_row = lax.rsqrt(jnp.maximum(row_ss, 1e-24))                   # 1/max(||s||,1e-12)
    labels_scaled = (labels.astype(jnp.float32) * inv_row).astype(jnp.bfloat16)
    supports_bf = sup32.astype(jnp.bfloat16)                          # [S, D]

    # --- lane/sublane-friendly zero padding + tiling --------------------------
    D_pad = _round_up(D, 128)
    C_pad0 = _round_up(C, 128)
    B_pad = _round_up(B, 8)
    s_tile, c_chunk, n_c = _choose_tiles(B_pad, D_pad, S, C_pad0)
    n_s = _cdiv(S, s_tile)
    S_pad = n_s * s_tile
    C_pad = n_c * c_chunk

    supports_bf = jnp.pad(supports_bf, ((0, S_pad - S), (0, D_pad - D)))
    labels_scaled = jnp.pad(labels_scaled, ((0, S_pad - S), (0, C_pad - C)))
    z_p = jnp.pad(z, ((0, B_pad - B), (0, D_pad - D)))

    cost = pl.CostEstimate(
        flops=2 * S_pad * D_pad * C_pad + 2 * B_pad * D_pad * C_pad,
        transcendentals=int(C_pad),
        bytes_accessed=int(n_c * supports_bf.size * 2      # supports read n_c x
                           + labels_scaled.size * 2
                           + n_c * z_p.size * 4
                           + B_pad * C_pad * 4),
    )

    vmem_limit = int(min(64 * 1024 * 1024,
                         max(_vmem_use(B_pad, D_pad, s_tile, c_chunk)
                             + 8 * 1024 * 1024,
                             16 * 1024 * 1024)))

    out = pl.pallas_call(
        t3a_kernel,
        out_shape=jax.ShapeDtypeStruct((B_pad, C_pad), jnp.float32),
        grid=(n_c, n_s),
        in_specs=[
            pl.BlockSpec((s_tile, D_pad), lambda j, k: (k, 0)),    # supports
            pl.BlockSpec((s_tile, c_chunk), lambda j, k: (k, j)),  # scaled labels
            pl.BlockSpec((B_pad, D_pad), lambda j, k: (0, 0)),     # z (resident)
        ],
        out_specs=pl.BlockSpec((B_pad, c_chunk), lambda j, k: (0, j)),
        scratch_shapes=[pltpu.VMEM((D_pad, c_chunk), jnp.float32)],
        compiler_params=pltpu.CompilerParams(
            dimension_semantics=("parallel", "arbitrary"),
            vmem_limit_bytes=vmem_limit),
        cost_estimate=cost,
    )(supports_bf, labels_scaled, z_p)

    return out[:B, :C]


# ------------------------------ host-side glue -------------------------------

def softmax_entropy_jnp(x):
    x = x - jnp.max(x, axis=1, keepdims=True)
    lse = jnp.log(jnp.sum(jnp.exp(x), axis=1, keepdims=True))
    logp = x - lse
    return -(jnp.exp(logp) * logp).sum(axis=1)


class T3AJax:
    """JAX port of T3A; the matmul/normalize hot path runs in Pallas.

    The support bank (supports / labels) stays device-resident; only the small
    per-row entropy / predicted-class vectors live on the host for the
    data-dependent, variable-length per-class top-K selection.
    """

    def __init__(self, classifier_w, classifier_b, filter_K):
        # classifier: Linear(D -> C); weight [C, D], bias [C]
        self.W = jnp.asarray(classifier_w, jnp.float32)
        self.b = jnp.asarray(classifier_b, jnp.float32)
        self.num_classes = int(self.W.shape[0])
        self.filter_K = filter_K

        warmup_supports = self.W                                      # [C, D]
        warmup_prob = warmup_supports @ self.W.T + self.b             # [C, C]
        self.supports = warmup_supports                               # device
        self.labels = jax.nn.one_hot(jnp.argmax(warmup_prob, axis=1),
                                     self.num_classes, dtype=jnp.float32)
        self.ent = np.asarray(softmax_entropy_jnp(warmup_prob))       # host
        self.y_hat = np.asarray(jnp.argmax(self.labels, axis=1))      # host

    def classify(self, z):
        return z @ self.W.T + self.b

    def select_supports(self):
        # TODO(synk): variable-length per-class top-K is data-dependent; the
        # index is built host-side from the small entropy / class vectors and
        # applied as a single device gather on the (device-resident) bank.
        all_idx = np.arange(len(self.ent))
        picked = []
        for i in range(self.num_classes):
            mask = self.y_hat == i
            order = np.argsort(self.ent[mask], kind="stable")
            picked.append(all_idx[mask][order][: self.filter_K])
        idx = np.concatenate(picked) if picked else all_idx
        idx_dev = jnp.asarray(idx, jnp.int32)
        self.supports = jnp.take(self.supports, idx_dev, axis=0)
        self.labels = jnp.take(self.labels, idx_dev, axis=0)
        self.ent = self.ent[idx]
        self.y_hat = self.y_hat[idx]
        return self.supports, self.labels

    def forward(self, x, adapt=False):
        # cached_loader=True path of T3A.forward: z = x.
        z = jnp.asarray(x, jnp.float32)
        if adapt:
            p = self.classify(z)
            yhat = jax.nn.one_hot(jnp.argmax(p, axis=1), self.num_classes,
                                  dtype=jnp.float32)
            ent = softmax_entropy_jnp(p)
            self.supports = jnp.concatenate([self.supports, z], axis=0)
            self.labels = jnp.concatenate([self.labels, yhat], axis=0)
            self.ent = np.concatenate([self.ent, np.asarray(ent)], axis=0)
            self.y_hat = np.concatenate(
                [self.y_hat, np.asarray(jnp.argmax(yhat, axis=1))], axis=0)
        supports, labels = self.select_supports()
        return t3a_adjust(z, supports, labels)


def reference_np(z, supports, labels):
    s = supports / np.maximum(
        np.linalg.norm(supports, axis=1, keepdims=True), 1e-12)
    w = s.T @ labels
    w = w / np.maximum(np.linalg.norm(w, axis=0, keepdims=True), 1e-12)
    return z @ w


# --------------------------------- main --------------------------------------

if __name__ == "__main__":
    B, D, C = 8, 32, 8          # batch, feature dim, num classes
    filter_K = 5

    key = jax.random.PRNGKey(0)
    kw, kb, kx = jax.random.split(key, 3)
    classifier_w = np.asarray(jax.random.normal(kw, (C, D), jnp.float32)) * 0.1
    classifier_b = np.asarray(jax.random.normal(kb, (C,), jnp.float32)) * 0.01
    x = np.asarray(jax.random.normal(kx, (B, D), jnp.float32))

    model = T3AJax(classifier_w, classifier_b, filter_K)

    # non-adaptive forward
    out = jax.block_until_ready(model.forward(x, adapt=False))
    ref = reference_np(x, np.asarray(model.supports), np.asarray(model.labels))
    np.testing.assert_allclose(np.asarray(out), ref, rtol=3e-2, atol=3e-2)

    # adaptive forward (grows + re-selects the support bank)
    out2 = jax.block_until_ready(model.forward(x, adapt=True))
    ref2 = reference_np(x, np.asarray(model.supports), np.asarray(model.labels))
    np.testing.assert_allclose(np.asarray(out2), ref2, rtol=3e-2, atol=3e-2)

    print("KERNEL_OK")
</pallas_src>

<mosaic_0001>
module attributes {stable_mosaic.version = 11 : i64} {
  func.func @t3a_kernel(%arg0: i32, %arg1: i32, %arg2: memref<16x128xbf16, #tpu.memory_space<vmem>>, %arg3: memref<16x128xbf16, #tpu.memory_space<vmem>>, %arg4: memref<8x128xf32, #tpu.memory_space<vmem>>, %arg5: memref<8x128xf32, #tpu.memory_space<vmem>>, %arg6: memref<128x128xf32, #tpu.memory_space<vmem>>) attributes {dimension_semantics = [#tpu.dimension_semantics<parallel>, #tpu.dimension_semantics<arbitrary>], iteration_bounds = array<i64: 1, 1>, scalar_prefetch = 0 : i64, scratch_operands = 1 : i64, tpu.core_type = #tpu.core_type<tc>, window_params = [{transform_indices = @transform_0, window_bounds = array<i64: 16, 128>}, {transform_indices = @transform_1, window_bounds = array<i64: 16, 128>}, {pipeline_mode = #tpu.pipeline_mode<synchronous>, transform_indices = @transform_2, window_bounds = array<i64: 8, 128>}, {transform_indices = @transform_3, window_bounds = array<i64: 8, 128>}]} {
    %c0_i32 = arith.constant 0 : i32
    %0 = arith.cmpi eq, %arg1, %c0_i32 : i32
    %1 = arith.extui %0 : i1 to i32
    %c0_i32_0 = arith.constant 0 : i32
    %2 = arith.cmpi ne, %1, %c0_i32_0 : i32
    scf.if %2 {
      %cst_10 = arith.constant 0.000000e+00 : f32
      %12 = vector.broadcast %cst_10 : f32 to vector<128x128xf32>
      %c0_11 = arith.constant 0 : index
      %c0_12 = arith.constant 0 : index
      %13 = vector.load %arg6[%c0_11, %c0_12] : memref<128x128xf32, #tpu.memory_space<vmem>>, vector<128x128xf32>
      tpu.vector_store %arg6[%c0_11, %c0_12], %12 {strides = array<i32>} : memref<128x128xf32, #tpu.memory_space<vmem>>, vector<128x128xf32>,
    } else {
    }
    %c0 = arith.constant 0 : index
    %c0_1 = arith.constant 0 : index
    %3 = vector.load %arg6[%c0, %c0_1] : memref<128x128xf32, #tpu.memory_space<vmem>>, vector<128x128xf32>
    %c0_2 = arith.constant 0 : index
    %c0_3 = arith.constant 0 : index
    %4 = vector.load %arg2[%c0_2, %c0_3] : memref<16x128xbf16, #tpu.memory_space<vmem>>, vector<16x128xbf16>
    %c0_4 = arith.constant 0 : index
    %c0_5 = arith.constant 0 : index
    %5 = vector.load %arg3[%c0_4, %c0_5] : memref<16x128xbf16, #tpu.memory_space<vmem>>, vector<16x128xbf16>
    %cst = arith.constant dense<0.000000e+00> : vector<128x128xf32>
    %6 = tpu.matmul %4, %5, %cst {dimension_numbers = #tpu.dot_dimension_numbers<[0], [0], [1], [1], [0, 1, 1, 1], [], []>} : vector<16x128xbf16>, vector<16x128xbf16>, vector<128x128xf32> -> vector<128x128xf32>
    %7 = arith.addf %3, %6 : vector<128x128xf32>
    %c0_6 = arith.constant 0 : index
    %c0_7 = arith.constant 0 : index
    %8 = vector.load %arg6[%c0_6, %c0_7] : memref<128x128xf32, #tpu.memory_space<vmem>>, vector<128x128xf32>
    tpu.vector_store %arg6[%c0_6, %c0_7], %7 {strides = array<i32>} : memref<128x128xf32, #tpu.memory_space<vmem>>, vector<128x128xf32>,
    %c0_i32_8 = arith.constant 0 : i32
    %9 = arith.cmpi eq, %arg1, %c0_i32_8 : i32
    %10 = arith.extui %9 : i1 to i32
    %c0_i32_9 = arith.constant 0 : i32
    %11 = arith.cmpi ne, %10, %c0_i32_9 : i32
    scf.if %11 {
      %c0_10 = arith.constant 0 : index
      %c0_11 = arith.constant 0 : index
      %12 = vector.load %arg6[%c0_10, %c0_11] : memref<128x128xf32, #tpu.memory_space<vmem>>, vector<128x128xf32>
      %13 = arith.mulf %12, %12 : vector<128x128xf32>
      %cst_12 = arith.constant dense<0.000000e+00> : vector<128xf32>
      %14 = vector.multi_reduction <add>, %13, %cst_12 [0] : vector<128x128xf32> to vector<128xf32>
      %15 = vector.shape_cast %14 : vector<128xf32> to vector<1x128xf32>
      %cst_13 = arith.constant 1.000000e-24 : f32
      %16 = vector.broadcast %cst_13 : f32 to vector<1x128xf32>
      %17 = arith.maximumf %15, %16 : vector<1x128xf32>
      %18 = math.rsqrt %17 : vector<1x128xf32>
      %c0_14 = arith.constant 0 : index
      %c0_15 = arith.constant 0 : index
      %19 = vector.load %arg4[%c0_14, %c0_15] : memref<8x128xf32, #tpu.memory_space<vmem>>, vector<8x128xf32>
      %cst_16 = arith.constant dense<0.000000e+00> : vector<8x128xf32>
      %20 = tpu.matmul %19, %12, %cst_16 {dimension_numbers = #tpu.dot_dimension_numbers<[1], [0], [0], [1], [0, 0, 1, 1], [], []>} : vector<8x128xf32>, vector<128x128xf32>, vector<8x128xf32> -> vector<8x128xf32>
      %21 = vector.broadcast %18 : vector<1x128xf32> to vector<8x128xf32>
      %22 = arith.mulf %20, %21 : vector<8x128xf32>
      %c0_17 = arith.constant 0 : index
      %c0_18 = arith.constant 0 : index
      %23 = vector.load %arg5[%c0_17, %c0_18] : memref<8x128xf32, #tpu.memory_space<vmem>>, vector<8x128xf32>
      tpu.vector_store %arg5[%c0_17, %c0_18], %22 {strides = array<i32>} : memref<8x128xf32, #tpu.memory_space<vmem>>, vector<8x128xf32>,
    } else {
    }
    return
  }
  func.func @transform_0(%arg0: i32, %arg1: i32) -> (i32, i32) {
    %c0_i32 = arith.constant 0 : i32
    %c0_i32_0 = arith.constant 0 : i32
    return %arg1, %c0_i32 : i32, i32
  }
  func.func @transform_1(%arg0: i32, %arg1: i32) -> (i32, i32) {
    %c0_i32 = arith.constant 0 : i32
    return %arg1, %arg0 : i32, i32
  }
  func.func @transform_2(%arg0: i32, %arg1: i32) -> (i32, i32) {
    %c0_i32 = arith.constant 0 : i32
    %c0_i32_0 = arith.constant 0 : i32
    %c0_i32_1 = arith.constant 0 : i32
    return %c0_i32, %c0_i32_0 : i32, i32
  }
  func.func @transform_3(%arg0: i32, %arg1: i32) -> (i32, i32) {
    %c0_i32 = arith.constant 0 : i32
    %c0_i32_0 = arith.constant 0 : i32
    return %c0_i32, %arg0 : i32, i32
  }
}

</mosaic_0001>

<bundles_post_ra>
// kernel: t3a_adjust.1
= control target key start
LH: loop header
LB: loop body
LE: loop exit
PB: predicated region body
PF: predicated region fallthrough
CT: control target
= control target key end

     0   :  { %s590_s0 = inlined_call_operand.vmem [shape: bf16[16,128], index: 0, kind: input, shape index: {}]   ;;  %s591_s1 = inlined_call_operand.vmem [shape: bf16[16,128], index: 1, kind: input, shape index: {}]   ;;  %s592_s2 = inlined_call_operand.vmem [shape: f32[8,128], index: 2, kind: input, shape index: {}]   ;;  %s593_s3 = inlined_call_operand.hbm [shape: f32[8,128], index: 3, kind: output, shape index: {}]  }
   0x1   :  { %v501_v0 = vld [vmem:[%s590_s0] sm:$0xff]  }
   0x2   :  { %v502_v1 = vld [vmem:[%s591_s1] sm:$0xff]   ;;  %62 = vxpose.xlu0.c.b16.start.end [1/1] (short) %v501_v0, 128 }
   0x3   :  { %8 = vsyncpa [#allocation4], 0  ;;  %419 = vmatprep.subr.bf16.mxu0 %v502_v1  ;;  %vm84_vm0 = vcmask 130048   ;;  %v529_v10 = vmov 0.0|0.0   ;;  %vm530_vm1 = vmmov 0   ;;  %v531_v11 = vmov 0.0  }
   0x4   :  { %420 = vmatpush3.bf16.msra.mxu0 %v502_v1  ;;  %472 = vmatprep.subr.bf16.mxu1 %v529_v10  ;;  %s532_s16 = smov [#allocation3]  }
   0x5   :  { %469 = vmatprep.mubr.msk.f32.mxu1 %vm530_vm1, %v531_v11  ;;  %s375_s17 = sshll.u32 %s532_s16, 4  ;;  %s376_s17 = int_to_ptr.vmem [resolvable:$true] %s375_s17 }
   0x6   :  { %s505_s18 = scalar_lea.vmem %s376_s17, 128  ;;  %p510_p1 = scmp.lt.s32.totalorder %s376_s17, %s376_s17 }
   0x7   :  { %p506_p0 = scmp.ne.s32.totalorder %s376_s17, %s505_s18  ;;  %p511_p2 = scmp.lt.s32.totalorder %s505_s18, %s505_s18 }
   0x9   :  { %p512_p3 = por %p511_p2, %p510_p1 }
   0xb   :  { %p513_p4 = pnand %p512_p3, %p506_p0 }
  0x68   :  { %v70_v2 = vpop.trf.xlu0 }
  0x69   :  { %421 = vmatprep.mubr.msk.bf16.mxu0 %vm84_vm0, %v70_v2 }
  0x6c   :  { %v71_v3 = vpop.trf.xlu0 }
  0x6d   :  { %422 = vmatmul.mubr.msk.bf16.vlgmr.msra.gmra.mrb[0].mxu0 %vm84_vm0, %v71_v3  ;;  %v296_v3 = vld [vmem:[%s592_s2] sm:$0xff] }
  0x70   :  { %v72_v4 = vpop.trf.xlu0 }
  0x71   :  { %425 = vmatprep.mubr.msk.bf16.mxu0 %vm84_vm0, %v72_v4 }
  0x74   :  { %v73_v5 = vpop.trf.xlu0 }
  0x75   :  { %426 = vmatmul.mubr.msk.bf16.gmra.mrb[4].mxu0 %vm84_vm0, %v73_v5 }
  0x78   :  { %v74_v6 = vpop.trf.xlu0 }
  0x79   :  { %429 = vmatprep.mubr.msk.bf16.mxu0 %vm84_vm0, %v74_v6 }
  0x7c   :  { %v75_v7 = vpop.trf.xlu0 }
  0x7d   :  { %430 = vmatmul.mubr.msk.bf16.gmra.mrb[8].mxu0 %vm84_vm0, %v75_v7 }
  0x80   :  { %v76_v8 = vpop.trf.xlu0 }
  0x81   :  { %433 = vmatprep.mubr.msk.bf16.mxu0 %vm84_vm0, %v76_v8 }
  0x84   :  { %v77_v9 = vpop.trf.xlu0 }
  0x85   :  { %434 = vmatmul.mubr.msk.bf16.gmra.mrb[12].mxu0 %vm84_vm0, %v77_v9 }
 0x140   :  { %v423_v12 = vpop.f32.mrb[0].mxu0 }
 0x141   :  { %v143_v13 = vpop.f32.mrb[1].mxu0  ;;  %v259_v20 = vmul.f32 %v423_v12, %v423_v12 }
 0x142   :  { %v424_v14 = vpop.f32.mrb[2].mxu0  ;;  %v257_v17 = vmul.f32 %v143_v13, %v143_v13 }
 0x143   :  { %v476_v15 = vpack.c.bf16 %v424_v14, %v423_v12  ;;  %v146_v16 = vpop.f32.mrb[3].mxu0  ;;  %v260_v22 = vmul.f32 %v424_v14, %v424_v14 }
 0x144   :  { %v258_v18 = vmul.f32 %v146_v16, %v146_v16  ;;  %v473_v19 = vpack.c.bf16 %v146_v16, %v143_v13 }
 0x146   :  { %v273_v21 = vadd.f32 %v258_v18, %v257_v17  ;;  %474 = vmatpush3.bf16.msra.mxu1 %v473_v19 }
 0x147   :  { %475 = vmatprep.subr.bf16.mxu1 %v529_v10 }
 0x148   :  { %v274_v23 = vadd.f32 %v273_v21, %v259_v20  ;;  %v427_v24 = vpop.f32.mrb[4].mxu0 }
 0x149   :  { %v159_v25 = vpop.f32.mrb[5].mxu0  ;;  %v263_v34 = vmul.f32 %v427_v24, %v427_v24 }
 0x14a   :  { %v261_v26 = vmul.f32 %v159_v25, %v159_v25  ;;  %v275_v27 = vadd.f32 %v274_v23, %v260_v22  ;;  %v428_v28 = vpop.f32.mrb[6].mxu0  ;;  %477 = vmatpush3.bf16.msra.mxu1 %v476_v15 }
 0x14b   :  { %v482_v29 = vpack.c.bf16 %v428_v28, %v427_v24  ;;  %v162_v30 = vpop.f32.mrb[7].mxu0  ;;  %478 = vmatprep.subr.bf16.mxu1 %v529_v10  ;;  %v264_v36 = vmul.f32 %v428_v28, %v428_v28 }
 0x14c   :  { %v276_v31 = vadd.f32 %v275_v27, %v261_v26  ;;  %v262_v32 = vmul.f32 %v162_v30, %v162_v30  ;;  %v479_v33 = vpack.c.bf16 %v162_v30, %v159_v25 }
 0x14e   :  { %v277_v35 = vadd.f32 %v276_v31, %v262_v32  ;;  %480 = vmatpush3.bf16.msra.mxu1 %v479_v33 }
 0x14f   :  { %481 = vmatprep.subr.bf16.mxu1 %v529_v10 }
 0x150   :  { %v278_v37 = vadd.f32 %v277_v35, %v263_v34  ;;  %v431_v38 = vpop.f32.mrb[8].mxu0 }
 0x151   :  { %v175_v39 = vpop.f32.mrb[9].mxu0  ;;  %v267_v48 = vmul.f32 %v431_v38, %v431_v38 }
 0x152   :  { %v265_v40 = vmul.f32 %v175_v39, %v175_v39  ;;  %v279_v41 = vadd.f32 %v278_v37, %v264_v36  ;;  %v432_v42 = vpop.f32.mrb[10].mxu0  ;;  %483 = vmatpush3.bf16.msra.mxu1 %v482_v29 }
 0x153   :  { %v488_v43 = vpack.c.bf16 %v432_v42, %v431_v38  ;;  %v178_v44 = vpop.f32.mrb[11].mxu0  ;;  %484 = vmatprep.subr.bf16.mxu1 %v529_v10  ;;  %v268_v50 = vmul.f32 %v432_v42, %v432_v42 }
 0x154   :  { %v280_v45 = vadd.f32 %v279_v41, %v265_v40  ;;  %v266_v46 = vmul.f32 %v178_v44, %v178_v44  ;;  %v485_v47 = vpack.c.bf16 %v178_v44, %v175_v39 }
 0x156   :  { %v281_v49 = vadd.f32 %v280_v45, %v266_v46  ;;  %486 = vmatpush3.bf16.msra.mxu1 %v485_v47 }
 0x157   :  { %487 = vmatprep.subr.bf16.mxu1 %v529_v10 }
 0x158   :  { %v282_v51 = vadd.f32 %v281_v49, %v267_v48  ;;  %v435_v52 = vpop.f32.mrb[12].mxu0 }
 0x159   :  { %v191_v53 = vpop.f32.mrb[13].mxu0  ;;  %v271_v62 = vmul.f32 %v435_v52, %v435_v52 }
 0x15a   :  { %v269_v54 = vmul.f32 %v191_v53, %v191_v53  ;;  %v283_v55 = vadd.f32 %v282_v51, %v268_v50  ;;  %v436_v56 = vpop.f32.mrb[14].mxu0  ;;  %489 = vmatpush3.bf16.msra.mxu1 %v488_v43 }
 0x15b   :  { %v494_v57 = vpack.c.bf16 %v436_v56, %v435_v52  ;;  %v194_v58 = vpop.f32.mrb[15].mxu0  ;;  %490 = vmatprep.subr.bf16.mxu1 %v529_v10  ;;  %v272_v0 = vmul.f32 %v436_v56, %v436_v56 }
 0x15c   :  { %v284_v59 = vadd.f32 %v283_v55, %v269_v54  ;;  %v270_v60 = vmul.f32 %v194_v58, %v194_v58  ;;  %v491_v61 = vpack.c.bf16 %v194_v58, %v191_v53 }
 0x15e   :  { %v285_v63 = vadd.f32 %v284_v59, %v270_v60  ;;  %492 = vmatpush3.bf16.msra.mxu1 %v491_v61 }
 0x15f   :  { %493 = vmatprep.subr.bf16.mxu1 %v529_v10 }
 0x160   :  { %v286_v1 = vadd.f32 %v285_v63, %v271_v62 }
 0x162   :  { %v287_v2 = vadd.f32 %v286_v1, %v272_v0  ;;  %495 = vmatpush3.bf16.msra.mxu1 %v494_v57 }
 0x164   :  { %v288_v4 = vrot.slane %v287_v2, 4 }
 0x165   :  { %470 = vmatmul.mubr.f32.vlgmr.msra.gmra.mrb[0].mxu1 %v296_v3 }
 0x166   :  { %v289_v5 = vadd.f32 %v288_v4, %v287_v2 }
 0x168   :  { %v290_v6 = vrot.slane %v289_v5, 2 }
 0x16a   :  { %v291_v7 = vadd.f32 %v290_v6, %v289_v5 }
 0x16c   :  { %v292_v8 = vrot.slane %v291_v7, 1 }
 0x16e   :  { %v293_v9 = vadd.f32 %v292_v8, %v291_v7 }
 0x170   :  { %v294_v11 = vmax.f32 %v293_v9, 1e-24 }
 0x172   :  { %503 = vrsqrt.f32 %v294_v11 }
 0x17c   :  { %v504_v10 = vpop.eup %503 }
 0x238   :  { %v363_v12 = vpop.f32.mrb[0].mxu1 }
 0x239   :  { %v367_v13 = vmul.f32 %v504_v10, %v363_v12  ;;  %v471_v14 = vpop.f32.mrb[1].mxu1 }
 0x23b   :  { %368 = vst [vmem:[#allocation3] sm:$0xff] %v367_v13 }
 0x23c   :  { %516 = shalt.err (!%p513_p4)
}
 0x23d   :  { %s517_s20 = scalar_lea.hbm %s593_s3, 128 }
 0x23e   :  { %p518_p5 = scmp.ne.s32.totalorder %s593_s3, %s517_s20  ;;  %p521_p6 = scmp.lt.u32.totalorder %s517_s20, %s593_s3 }
 0x240   :  { %p523_p7 = pnand %p521_p6, %p518_p5 }
 0x242   :  { %526 = shalt.err (!%p523_p7)
}
 0x243   :  { %378 = dma.vmem_to_hbm [thread:$0]  %s376_s17, 128, %s593_s3, [#allocation4]  }
 0x244   :  { %527 = dma.done.wait [#allocation4], 128  }
 0x245   :  { %528 = vsyncadd [#allocation4], 4294967168 }
 0x246   :  { %382 = vsyncpa [#allocation4], 1 }

</bundles_post_ra>
